<compile_context>
chip_gen: v7x
topology: tpu7x:2x2x1
jax: 0.10.0
libtpu: 0.0.40
codegen_flags: <defaults>
</compile_context>

<pallas_src>
import functools

import jax
import jax.numpy as jnp
from jax.experimental import pallas as pl
from jax.experimental.pallas import tpu as pltpu


def _gap_kernel(x_ref, o_ref, acc_ref, *, inv_count):
    """Row-wise mean over the (padded) spatial axis.

    x_ref  : (tm, ts)  input tile; rows = flattened (N*C), cols = spatial chunk
    o_ref  : (tm, 1)   per-row mean, written on the last reduction step
    acc_ref: (tm, 1)   f32 running row-sum, resident across the reduction axis
    """
    j = pl.program_id(1)

    @pl.when(j == 0)
    def _init():
        acc_ref[...] = jnp.zeros_like(acc_ref)

    # Partial row-sum of this spatial chunk, accumulated in f32.
    acc_ref[...] += jnp.sum(x_ref[...].astype(jnp.float32), axis=1, keepdims=True)

    @pl.when(j == pl.num_programs(1) - 1)
    def _finalize():
        o_ref[...] = (acc_ref[...] * inv_count).astype(o_ref.dtype)


def _round_up(n, m):
    return ((n + m - 1) // m) * m


def global_avg_pool2d(x, *, tm_max=512, ts_max=2048):
    """Global average pooling: NCHW -> (N, C, 1, 1)."""
    N, C, H, W = x.shape
    M, S = N * C, H * W

    # (N, C, H, W) -> (N*C, H*W): contiguous reshape, no transpose / copy.
    x2 = x.reshape(M, S)

    # Tile sizes: sublane (row) dim a multiple of 8, lane (spatial) dim a
    # multiple of 128.  tm*ts*4B*2buf <= 8 MiB, comfortably under scoped VMEM
    # on v5e (16 MiB) / v6e / v7x (32 MiB).
    tm = min(_round_up(M, 8), tm_max)
    ts = min(_round_up(S, 128), ts_max)
    Mp = _round_up(M, tm)
    Sp = _round_up(S, ts)
    if (Mp, Sp) != (M, S):
        # Zero padding leaves row sums unchanged; divide by the true S below.
        x2 = jnp.pad(x2, ((0, Mp - M), (0, Sp - S)))

    grid = (Mp // tm, Sp // ts)
    kernel = functools.partial(_gap_kernel, inv_count=1.0 / float(S))

    out = pl.pallas_call(
        kernel,
        out_shape=jax.ShapeDtypeStruct((Mp, 1), x.dtype),
        grid_spec=pltpu.PrefetchScalarGridSpec(
            num_scalar_prefetch=0,
            grid=grid,
            in_specs=[pl.BlockSpec((tm, ts), lambda i, j: (i, j))],
            # Output block stays resident across the reduction axis (j).
            out_specs=pl.BlockSpec((tm, 1), lambda i, j: (i, 0)),
            scratch_shapes=[pltpu.VMEM((tm, 1), jnp.float32)],
        ),
        compiler_params=pltpu.CompilerParams(
            dimension_semantics=("parallel", "arbitrary"),
            vmem_limit_bytes=32 * 1024 * 1024,
        ),
        cost_estimate=pl.CostEstimate(
            flops=Mp * Sp,  # one add per element
            transcendentals=0,
            bytes_accessed=Mp * Sp * jnp.dtype(x.dtype).itemsize + Mp * 4,
        ),
    )(x2)

    return out[:M, 0].reshape(N, C, 1, 1)


def global_avg_pool2d_reference(x):
    """Pure-JAX reference matching the PyTorch module's semantics."""
    n, c = x.shape[:2]
    return jnp.mean(x.reshape(n, c, -1), axis=2).reshape(n, c, 1, 1)


if __name__ == "__main__":
    key = jax.random.PRNGKey(0)
    k0, k1 = jax.random.split(key)

    # Small shape consistent with the module: batch=2, channels=4, spatial=16.
    N, C, H, W = 2, 4, 16, 16
    x = jax.random.normal(k0, (N, C, H, W), dtype=jnp.float32)

    out = jax.block_until_ready(global_avg_pool2d(x))
    ref = jax.block_until_ready(global_avg_pool2d_reference(x))
    assert out.shape == (N, C, 1, 1)
    assert jnp.allclose(out, ref, rtol=1e-5, atol=1e-5), \
        f"max abs err = {jnp.max(jnp.abs(out - ref))}"

    # Second check: ragged spatial size > one tile, exercises the tiled
    # reduction axis, zero-padding, and the pl.when init/finalize path.
    x2 = jax.random.normal(k1, (2, 16, 48, 48), dtype=jnp.float32)
    out2 = jax.block_until_ready(global_avg_pool2d(x2))
    ref2 = jax.block_until_ready(global_avg_pool2d_reference(x2))
    assert jnp.allclose(out2, ref2, rtol=1e-5, atol=1e-5), \
        f"max abs err = {jnp.max(jnp.abs(out2 - ref2))}"

    print("KERNEL_OK")
</pallas_src>

<mosaic_0001>
module attributes {stable_mosaic.version = 11 : i64} {
  func.func @_gap_kernel(%arg0: i32, %arg1: i32, %arg2: memref<8x256xf32, #tpu.memory_space<vmem>>, %arg3: memref<8x1xf32, #tpu.memory_space<vmem>>, %arg4: memref<8x1xf32, #tpu.memory_space<vmem>>) attributes {dimension_semantics = [#tpu.dimension_semantics<parallel>, #tpu.dimension_semantics<arbitrary>], iteration_bounds = array<i64: 1, 1>, scalar_prefetch = 0 : i64, scratch_operands = 1 : i64, tpu.core_type = #tpu.core_type<tc>, window_params = [{transform_indices = @transform_0, window_bounds = array<i64: 8, 256>}, {transform_indices = @transform_1, window_bounds = array<i64: 8, 1>}]} {
    %c0_i32 = arith.constant 0 : i32
    %0 = arith.cmpi eq, %arg1, %c0_i32 : i32
    %1 = arith.extui %0 : i1 to i32
    %c0_i32_0 = arith.constant 0 : i32
    %2 = arith.cmpi ne, %1, %c0_i32_0 : i32
    scf.if %2 {
      %cst_8 = arith.constant 0.000000e+00 : f32
      %12 = vector.broadcast %cst_8 : f32 to vector<8x1xf32>
      %c0_9 = arith.constant 0 : index
      %c0_10 = arith.constant 0 : index
      %13 = vector.load %arg4[%c0_9, %c0_10] : memref<8x1xf32, #tpu.memory_space<vmem>>, vector<8x1xf32>
      tpu.vector_store %arg4[%c0_9, %c0_10], %12 {strides = array<i32>} : memref<8x1xf32, #tpu.memory_space<vmem>>, vector<8x1xf32>,
    } else {
    }
    %c0 = arith.constant 0 : index
    %c0_1 = arith.constant 0 : index
    %3 = vector.load %arg4[%c0, %c0_1] : memref<8x1xf32, #tpu.memory_space<vmem>>, vector<8x1xf32>
    %c0_2 = arith.constant 0 : index
    %c0_3 = arith.constant 0 : index
    %4 = vector.load %arg2[%c0_2, %c0_3] : memref<8x256xf32, #tpu.memory_space<vmem>>, vector<8x256xf32>
    %cst = arith.constant dense<0.000000e+00> : vector<8xf32>
    %5 = vector.multi_reduction <add>, %4, %cst [1] : vector<8x256xf32> to vector<8xf32>
    %6 = vector.shape_cast %5 : vector<8xf32> to vector<8x1xf32>
    %7 = arith.addf %3, %6 : vector<8x1xf32>
    %c0_4 = arith.constant 0 : index
    %c0_5 = arith.constant 0 : index
    %8 = vector.load %arg4[%c0_4, %c0_5] : memref<8x1xf32, #tpu.memory_space<vmem>>, vector<8x1xf32>
    tpu.vector_store %arg4[%c0_4, %c0_5], %7 {strides = array<i32>} : memref<8x1xf32, #tpu.memory_space<vmem>>, vector<8x1xf32>,
    %c0_i32_6 = arith.constant 0 : i32
    %9 = arith.cmpi eq, %arg1, %c0_i32_6 : i32
    %10 = arith.extui %9 : i1 to i32
    %c0_i32_7 = arith.constant 0 : i32
    %11 = arith.cmpi ne, %10, %c0_i32_7 : i32
    scf.if %11 {
      %c0_8 = arith.constant 0 : index
      %c0_9 = arith.constant 0 : index
      %12 = vector.load %arg4[%c0_8, %c0_9] : memref<8x1xf32, #tpu.memory_space<vmem>>, vector<8x1xf32>
      %cst_10 = arith.constant 3.906250e-03 : f32
      %13 = vector.broadcast %cst_10 : f32 to vector<8x1xf32>
      %14 = arith.mulf %12, %13 : vector<8x1xf32>
      %c0_11 = arith.constant 0 : index
      %c0_12 = arith.constant 0 : index
      %15 = vector.load %arg3[%c0_11, %c0_12] : memref<8x1xf32, #tpu.memory_space<vmem>>, vector<8x1xf32>
      tpu.vector_store %arg3[%c0_11, %c0_12], %14 {strides = array<i32>} : memref<8x1xf32, #tpu.memory_space<vmem>>, vector<8x1xf32>,
    } else {
    }
    return
  }
  func.func @transform_0(%arg0: i32, %arg1: i32) -> (i32, i32) {
    %c0_i32 = arith.constant 0 : i32
    return %arg0, %arg1 : i32, i32
  }
  func.func @transform_1(%arg0: i32, %arg1: i32) -> (i32, i32) {
    %c0_i32 = arith.constant 0 : i32
    %c0_i32_0 = arith.constant 0 : i32
    return %arg0, %c0_i32 : i32, i32
  }
}

</mosaic_0001>

<bundles_post_ra>
// kernel: tpu_custom_call.1
= control target key start
LH: loop header
LB: loop body
LE: loop exit
PB: predicated region body
PF: predicated region fallthrough
CT: control target
= control target key end

     0   :  { %6 = vsyncpa [#allocation4], 0  ;;  %s72_s6 = smov [#allocation3]   ;;  %s99_s0 = inlined_call_operand.hbm [shape: f32[8,256], index: 0, kind: input, shape index: {}]   ;;  %s100_s1 = inlined_call_operand.vmem [shape: f32[8,1], index: 1, kind: output, shape index: {}]  }
   0x1   :  { %s13_s7 = sshll.u32 %s72_s6, 4  ;;  %s48_s10 = scalar_lea.hbm %s99_s0, 256  ;;  %s14_s7 = int_to_ptr.vmem [resolvable:$true] %s13_s7 }
   0x2   :  { %p49_p0 = scmp.ne.s32.totalorder %s99_s0, %s48_s10  ;;  %p52_p1 = scmp.lt.u32.totalorder %s48_s10, %s99_s0 }
   0x4   :  { %p54_p2 = pnand %p52_p1, %p49_p0 }
   0x6   :  { %57 = shalt.err (!%p54_p2)
}
   0x7   :  { %s58_s15 = scalar_lea.vmem %s14_s7, 256  ;;  %p63_p4 = scmp.lt.s32.totalorder %s14_s7, %s14_s7 }
   0x8   :  { %p59_p3 = scmp.ne.s32.totalorder %s14_s7, %s58_s15  ;;  %p64_p5 = scmp.lt.s32.totalorder %s58_s15, %s58_s15 }
   0xa   :  { %p65_p6 = por %p64_p5, %p63_p4 }
   0xc   :  { %p66_p7 = pnand %p65_p6, %p59_p3 }
   0xe   :  { %69 = shalt.err (!%p66_p7)
}
   0xf   :  { %16 = dma.hbm_to_vmem [thread:$0]  %s99_s0, 256, %s14_s7, [#allocation4]  }
  0x10   :  { %70 = dma.done.wait [#allocation4], 256  }
  0x11   :  { %71 = vsyncadd [#allocation4], 4294967040  ;;  %vm24_vm0 = vcmask 7168   ;;  %v73_v0 = vmov 0.0   ;;  %v27_v1 = vld [vmem:[#allocation3] sm:$0xff]  ;;  %v28_v2 = vld [vmem:[#allocation3 + $0x8] sm:$0xff] }
  0x12   :  { %25 = vst.msk [vmem:[#allocation2] sm:$0xff] %vm24_vm0, %v73_v0  ;;  %v29_v3 = vadd.f32 %v28_v2, %v27_v1 }
  0x14   :  { %30 = vadd.xlane.f32.xlu0 %v29_v3 }
  0x19   :  { %v26_v4 = vld [vmem:[#allocation2] sm:$0xff] }
  0xa1   :  { %v31_v5 = vpop.xlane.xlu0 %30 }
  0xa2   :  { %v32_v6 = vadd.f32 %v31_v5, %v26_v4 }
  0xa4   :  { %34 = vst.msk [vmem:[#allocation2] sm:$0xff] %vm24_vm0, %v32_v6 }
  0xab   :  { %v38_v7 = vld [vmem:[#allocation2] sm:$0xff] }
  0xac   :  { %v39_v8 = vmul.f32 0.00390625, %v38_v7 }
  0xae   :  { %40 = vst.msk [vmem:[%s100_s1] sm:$0xff] %vm24_vm0, %v39_v8 }
  0xaf   :  { %45 = vsyncpa [#allocation4], 1 }

</bundles_post_ra>
